<compile_context>
chip_gen: v5e
topology: v5e:2x2
jax: 0.10.0
libtpu: 0.0.40
codegen_flags: <defaults>
</compile_context>

<pallas_src>
import functools
import math

import jax
import jax.numpy as jnp
from jax.experimental import pallas as pl
from jax.experimental.pallas import tpu as pltpu


# ---------------------------------------------------------------------------
# Fused kernel: one grid step == one block of `BB` batch elements.
# ---------------------------------------------------------------------------
def _mt_adapter_block_kernel(
    x_ref,        # (BB, T, E)   original input X
    t_ref,        # (BB, T, TD)  task embedding
    lnw_ref,      # (1, E)
    lnb_ref,      # (1, E)
    wqkv_ref,     # (E, 3E)  fused Q|K|V weight (compute dtype)
    bqkv_ref,     # (1, 3E)  fused Q|K|V bias (f32)
    wp_ref,       # (E, E)
    bp_ref,       # (1, E)
    w1r_ref,      # (E, Z)   adapter fc1, rows acting on R
    w1t_ref,      # (TD, Z)  adapter fc1, rows acting on task_embed
    b1_ref,       # (1, Z)
    w2_ref,       # (Z, E)
    b2_ref,       # (1, E)
    out_ref,      # (BB, T, E)
    *,
    num_heads: int,
    compute_dtype,
):
    f32 = jnp.float32
    cd = compute_dtype
    approx = jnp.dtype(cd) != jnp.dtype(f32)   # approx recip only on fast path

    x3 = x_ref[...]                            # (BB, T, E) f32
    BB, T, E = x3.shape
    H = num_heads
    hd = E // H
    scale = 1.0 / math.sqrt(hd)                # use_muP_factor = False

    # Merge leading dims so every dense op runs on (BB*T, ...) rows at once.
    x = x3.reshape(BB * T, E)
    t = t_ref[...].reshape(BB * T, t_ref.shape[-1])

    # ---- LayerNorm (pre_r_ln), f32 ----
    mu = jnp.mean(x, axis=-1, keepdims=True)
    var = jnp.mean(jnp.square(x - mu), axis=-1, keepdims=True)
    xn = (x - mu) * jax.lax.rsqrt(var + 1e-5) * lnw_ref[...] + lnb_ref[...]

    # ---- fused Q/K/V projection: one MXU matmul ----
    qkv = jnp.dot(xn.astype(cd), wqkv_ref[...],
                  preferred_element_type=f32) + bqkv_ref[...]      # (BB*T, 3E)
    q = qkv[:, :E]
    k = qkv[:, E:2 * E]
    v = qkv[:, 2 * E:]

    # ---- masks built in-kernel (no HBM mask input) ----
    qi = jax.lax.broadcasted_iota(jnp.int32, (T, T), 0)
    ki = jax.lax.broadcasted_iota(jnp.int32, (T, T), 1)
    causal_bias = jnp.where(qi >= ki, 0.0, -1e9).astype(f32)       # (T, T)

    # head_mask[h, :, c] == 1 iff lane c belongs to head h.
    col = jax.lax.broadcasted_iota(jnp.int32, (T, E), 1)
    head_mask = jnp.stack(
        [jnp.logical_and(col >= h * hd, col < (h + 1) * hd).astype(f32)
         for h in range(H)],
        axis=0)                                                    # (H, T, E)

    # ---- multi-head causal attention, heads batched along sublanes ----
    # Zeroing the other heads' columns of Q lets a single (H*T, E) @ (E, T)
    # matmul produce all H per-head logit blocks; the same mask routes the
    # per-head outputs back into their concat lane slots.  No per-head lane
    # slices, no lane-axis concatenates, no activation transposes.
    attn = []
    for b in range(BB):                         # BB <= 2, unrolled at trace
        rows = slice(b * T, (b + 1) * T)
        qb, kb, vb = q[rows], k[rows], v[rows]

        qr = (qb[None, :, :] * head_mask).reshape(H * T, E)        # (H*T, E)
        s = jax.lax.dot_general(
            qr.astype(cd), kb.astype(cd),
            dimension_numbers=(((1,), (1,)), ((), ())),            # contract E
            preferred_element_type=f32) * scale                    # (H*T, T)

        s = s.reshape(H, T, T) + causal_bias[None]                 # (H, T, T)
        m = jnp.max(s, axis=-1, keepdims=True)
        p = jnp.exp(s - m)
        p = p * pl.reciprocal(jnp.sum(p, axis=-1, keepdims=True), approx=approx)

        o = jnp.dot(p.reshape(H * T, T).astype(cd), vb.astype(cd),
                    preferred_element_type=f32)                    # (H*T, E)

        oh = o.reshape(H, T, E) * head_mask                        # (H, T, E)
        a_b = oh[0]
        for h in range(1, H):
            a_b = a_b + oh[h]                                      # (T, E)
        attn.append(a_b)
    a = attn[0] if BB == 1 else jnp.concatenate(attn, axis=0)      # (BB*T, E)

    # ---- attention output projection -> residual branch R ----
    r = jnp.dot(a.astype(cd), wp_ref[...], preferred_element_type=f32) + bp_ref[...]

    # ---- MTAdapter MLP without lane concat:
    #      concat([R, t]) @ W1 == R @ W1_r + t @ W1_t
    h1 = (jnp.dot(r.astype(cd), w1r_ref[...], preferred_element_type=f32)
          + jnp.dot(t.astype(cd), w1t_ref[...], preferred_element_type=f32)
          + b1_ref[...])
    h1 = jnp.maximum(h1, 0.0)
    mlp = jnp.dot(h1.astype(cd), w2_ref[...], preferred_element_type=f32) + b2_ref[...]

    # ---- final residual: X + R + adapter-net output ----
    out_ref[...] = (x + r + mlp).reshape(BB, T, E).astype(out_ref.dtype)


# ---------------------------------------------------------------------------
# Wrapper
# ---------------------------------------------------------------------------
def _default_batch_block(batch):
    """v7x has 2 TensorCores -> keep a per-batch 'parallel' grid; v5e/v6e have
    one TC where the grid is a serial loop -> fold the whole batch into one
    step."""
    try:
        kind = jax.devices()[0].device_kind.lower()
    except Exception:
        kind = ""
    multi_tc = ("v7" in kind) or ("7x" in kind)
    return 1 if (multi_tc and batch > 1) else batch


def mt_adapter_recurrent_block(x, task_embed, params, *, num_heads,
                               compute_dtype=jnp.bfloat16, batch_block=None):
    """x: (B,T,E) f32, task_embed: (B,T,TD) f32. Returns (B,T,E) f32."""
    B, T, E = x.shape
    TD = task_embed.shape[-1]
    Z = params["w1"].shape[-1]
    cd = jnp.dtype(compute_dtype)

    if batch_block is None:
        batch_block = _default_batch_block(B)
    assert B % batch_block == 0
    BB = batch_block
    grid = (B // BB,)

    f32 = jnp.float32
    # --- wrapper-side weight packing (layout plumbing, outside the kernel) ---
    wqkv = jnp.concatenate([params["wq"], params["wk"], params["wv"]], axis=1).astype(cd)
    bqkv = jnp.concatenate([params["bq"], params["bk"], params["bv"]], axis=1).astype(f32)
    wp = params["wp"].astype(cd)
    w1r = params["w1"][:E].astype(cd)      # rows of fc1 acting on R
    w1t = params["w1"][E:].astype(cd)      # rows of fc1 acting on task_embed
    w2 = params["w2"].astype(cd)

    def w_spec(shape):
        return pl.BlockSpec(shape, lambda i: (0, 0))

    in_specs = [
        pl.BlockSpec((BB, T, E), lambda i: (i, 0, 0)),     # x
        pl.BlockSpec((BB, T, TD), lambda i: (i, 0, 0)),    # task_embed
        w_spec((1, E)), w_spec((1, E)),                    # ln w/b
        w_spec((E, 3 * E)), w_spec((1, 3 * E)),            # fused qkv w/b
        w_spec((E, E)), w_spec((1, E)),                    # out-proj w/b
        w_spec((E, Z)), w_spec((TD, Z)), w_spec((1, Z)),   # adapter fc1 (split) + b
        w_spec((Z, E)), w_spec((1, E)),                    # adapter fc2 w/b
    ]
    out_spec = pl.BlockSpec((BB, T, E), lambda i: (i, 0, 0))

    kernel = functools.partial(_mt_adapter_block_kernel,
                               num_heads=num_heads, compute_dtype=cd)

    return pl.pallas_call(
        kernel,
        out_shape=jax.ShapeDtypeStruct((B, T, E), f32),
        grid_spec=pltpu.PrefetchScalarGridSpec(
            num_scalar_prefetch=0,
            grid=grid,
            in_specs=in_specs,
            out_specs=out_spec,
        ),
        compiler_params=pltpu.CompilerParams(
            dimension_semantics=("parallel",),
        ),
    )(
        x.astype(f32), task_embed.astype(f32),
        params["ln_w"].astype(f32), params["ln_b"].astype(f32),
        wqkv, bqkv,
        wp, params["bp"].astype(f32),
        w1r, w1t, params["b1"].astype(f32),
        w2, params["b2"].astype(f32),
    )


# ---------------------------------------------------------------------------
# Plain-JAX reference (for correctness check).  `dtype` mirrors the kernel's
# matmul-operand dtype (f32 accumulation in both).
# ---------------------------------------------------------------------------
def reference(x, t, p, num_heads, dtype=jnp.float32):
    f32 = jnp.float32
    c = lambda a: a.astype(dtype)
    dot = lambda a, b: jnp.dot(c(a), c(b), preferred_element_type=f32)

    mu = jnp.mean(x, -1, keepdims=True)
    var = jnp.mean((x - mu) ** 2, -1, keepdims=True)
    xn = (x - mu) * jax.lax.rsqrt(var + 1e-5) * p["ln_w"] + p["ln_b"]

    q = dot(xn, p["wq"]) + p["bq"]
    k = dot(xn, p["wk"]) + p["bk"]
    v = dot(xn, p["wv"]) + p["bv"]

    B, T, E = x.shape
    hd = E // num_heads
    scale = 1.0 / math.sqrt(hd)
    qh = q.reshape(B, T, num_heads, hd).transpose(0, 2, 1, 3)
    kh = k.reshape(B, T, num_heads, hd).transpose(0, 2, 1, 3)
    vh = v.reshape(B, T, num_heads, hd).transpose(0, 2, 1, 3)

    logits = jnp.einsum("bhqd,bhkd->bhqk", c(qh), c(kh),
                        preferred_element_type=f32) * scale
    causal = jnp.tril(jnp.ones((T, T), bool))
    logits = jnp.where(causal, logits, -1e9)
    probs = jax.nn.softmax(logits, axis=-1)
    a = jnp.einsum("bhqk,bhkd->bhqd", c(probs), c(vh), preferred_element_type=f32)
    a = a.transpose(0, 2, 1, 3).reshape(B, T, E)

    r = dot(a, p["wp"]) + p["bp"]
    cat = jnp.concatenate([r, t], axis=-1)
    h1 = jnp.maximum(dot(cat, p["w1"]) + p["b1"], 0.0)
    mlp = dot(h1, p["w2"]) + p["b2"]
    return x + r + mlp


# ---------------------------------------------------------------------------
if __name__ == "__main__":
    B, T, E = 2, 8, 32          # batch, seq, in_dim (x_size)
    TD, Z = 16, 32              # task_embed_dim, adapter z_dim
    H = 4                       # attention heads

    key = jax.random.PRNGKey(0)
    ks = jax.random.split(key, 16)

    def nrm(k, shape, std):
        return jax.random.normal(k, shape, jnp.float32) * std

    params = dict(
        ln_w=jnp.ones((1, E), jnp.float32),
        ln_b=jnp.zeros((1, E), jnp.float32),
        wq=nrm(ks[0], (E, E), 1.0 / math.sqrt(E)), bq=nrm(ks[1], (1, E), 0.02),
        wk=nrm(ks[2], (E, E), 1.0 / math.sqrt(E)), bk=nrm(ks[3], (1, E), 0.02),
        wv=nrm(ks[4], (E, E), 1.0 / math.sqrt(E)), bv=nrm(ks[5], (1, E), 0.02),
        wp=nrm(ks[6], (E, E), 1.0 / math.sqrt(E)), bp=nrm(ks[7], (1, E), 0.02),
        w1=nrm(ks[8], (E + TD, Z), 1.0 / math.sqrt(E + TD)), b1=nrm(ks[9], (1, Z), 0.02),
        w2=nrm(ks[10], (Z, E), 1.0 / math.sqrt(Z)), b2=nrm(ks[11], (1, E), 0.02),
    )

    x = nrm(ks[12], (B, T, E), 1.0)
    task_embed = nrm(ks[13], (B, T, TD), 1.0)

    # --- fast path (default): bf16 matmul operands + approx softmax recip,
    #     batch layout auto-chosen from the TPU generation. ---
    out = mt_adapter_recurrent_block(x, task_embed, params, num_heads=H)
    out = jax.block_until_ready(out)
    assert out.shape == (B, T, E) and out.dtype == jnp.float32
    ref_bf16 = reference(x, task_embed, params, H, dtype=jnp.bfloat16)
    assert jnp.allclose(out, ref_bf16, rtol=2e-2, atol=2e-2), "bf16 path mismatch"

    # --- full-precision path, both batch layouts (folded & per-batch grid) ---
    ref_f32 = reference(x, task_embed, params, H, dtype=jnp.float32)
    for bb in (B, 1):
        out_f32 = mt_adapter_recurrent_block(
            x, task_embed, params, num_heads=H,
            compute_dtype=jnp.float32, batch_block=bb)
        out_f32 = jax.block_until_ready(out_f32)
        assert jnp.allclose(out_f32, ref_f32, rtol=2e-4, atol=2e-4), (
            "f32 path mismatch (batch_block=%d)" % bb)

    print("KERNEL_OK")
</pallas_src>

<mosaic_0001>
module attributes {stable_mosaic.version = 11 : i64} {
  func.func @_mt_adapter_block_kernel(%arg0: i32, %arg1: memref<2x8x32xf32, #tpu.memory_space<vmem>>, %arg2: memref<2x8x16xf32, #tpu.memory_space<vmem>>, %arg3: memref<1x32xf32, #tpu.memory_space<vmem>>, %arg4: memref<1x32xf32, #tpu.memory_space<vmem>>, %arg5: memref<32x96xbf16, #tpu.memory_space<vmem>>, %arg6: memref<1x96xf32, #tpu.memory_space<vmem>>, %arg7: memref<32x32xbf16, #tpu.memory_space<vmem>>, %arg8: memref<1x32xf32, #tpu.memory_space<vmem>>, %arg9: memref<32x32xbf16, #tpu.memory_space<vmem>>, %arg10: memref<16x32xbf16, #tpu.memory_space<vmem>>, %arg11: memref<1x32xf32, #tpu.memory_space<vmem>>, %arg12: memref<32x32xbf16, #tpu.memory_space<vmem>>, %arg13: memref<1x32xf32, #tpu.memory_space<vmem>>, %arg14: memref<2x8x32xf32, #tpu.memory_space<vmem>>) attributes {dimension_semantics = [#tpu.dimension_semantics<parallel>], iteration_bounds = array<i64: 1>, scalar_prefetch = 0 : i64, scratch_operands = 0 : i64, tpu.core_type = #tpu.core_type<tc>, window_params = [{transform_indices = @transform_0, window_bounds = array<i64: 2, 8, 32>}, {transform_indices = @transform_1, window_bounds = array<i64: 2, 8, 16>}, {pipeline_mode = #tpu.pipeline_mode<synchronous>, transform_indices = @transform_2, window_bounds = array<i64: 1, 32>}, {pipeline_mode = #tpu.pipeline_mode<synchronous>, transform_indices = @transform_3, window_bounds = array<i64: 1, 32>}, {pipeline_mode = #tpu.pipeline_mode<synchronous>, transform_indices = @transform_4, window_bounds = array<i64: 32, 96>}, {pipeline_mode = #tpu.pipeline_mode<synchronous>, transform_indices = @transform_5, window_bounds = array<i64: 1, 96>}, {pipeline_mode = #tpu.pipeline_mode<synchronous>, transform_indices = @transform_6, window_bounds = array<i64: 32, 32>}, {pipeline_mode = #tpu.pipeline_mode<synchronous>, transform_indices = @transform_7, window_bounds = array<i64: 1, 32>}, {pipeline_mode = #tpu.pipeline_mode<synchronous>, transform_indices = @transform_8, window_bounds = array<i64: 32, 32>}, {pipeline_mode = #tpu.pipeline_mode<synchronous>, transform_indices = @transform_9, window_bounds = array<i64: 16, 32>}, {pipeline_mode = #tpu.pipeline_mode<synchronous>, transform_indices = @transform_10, window_bounds = array<i64: 1, 32>}, {pipeline_mode = #tpu.pipeline_mode<synchronous>, transform_indices = @transform_11, window_bounds = array<i64: 32, 32>}, {pipeline_mode = #tpu.pipeline_mode<synchronous>, transform_indices = @transform_12, window_bounds = array<i64: 1, 32>}, {transform_indices = @transform_13, window_bounds = array<i64: 2, 8, 32>}]} {
    %c0 = arith.constant 0 : index
    %c0_0 = arith.constant 0 : index
    %c0_1 = arith.constant 0 : index
    %0 = vector.load %arg1[%c0, %c0_0, %c0_1] : memref<2x8x32xf32, #tpu.memory_space<vmem>>, vector<2x8x32xf32>
    %1 = vector.shape_cast %0 : vector<2x8x32xf32> to vector<16x32xf32>
    %c0_2 = arith.constant 0 : index
    %c0_3 = arith.constant 0 : index
    %c0_4 = arith.constant 0 : index
    %2 = vector.load %arg2[%c0_2, %c0_3, %c0_4] : memref<2x8x16xf32, #tpu.memory_space<vmem>>, vector<2x8x16xf32>
    %3 = vector.shape_cast %2 : vector<2x8x16xf32> to vector<16x16xf32>
    %cst = arith.constant dense<0.000000e+00> : vector<16xf32>
    %4 = vector.multi_reduction <add>, %1, %cst [1] : vector<16x32xf32> to vector<16xf32>
    %5 = vector.shape_cast %4 : vector<16xf32> to vector<16x1xf32>
    %cst_5 = arith.constant 3.200000e+01 : f32
    %6 = vector.broadcast %cst_5 : f32 to vector<16x1xf32>
    %7 = arith.divf %5, %6 : vector<16x1xf32>
    %8 = vector.broadcast %7 : vector<16x1xf32> to vector<16x32xf32>
    %9 = arith.subf %1, %8 : vector<16x32xf32>
    %10 = arith.mulf %9, %9 : vector<16x32xf32>
    %cst_6 = arith.constant dense<0.000000e+00> : vector<16xf32>
    %11 = vector.multi_reduction <add>, %10, %cst_6 [1] : vector<16x32xf32> to vector<16xf32>
    %12 = vector.shape_cast %11 : vector<16xf32> to vector<16x1xf32>
    %cst_7 = arith.constant 3.200000e+01 : f32
    %13 = vector.broadcast %cst_7 : f32 to vector<16x1xf32>
    %14 = arith.divf %12, %13 : vector<16x1xf32>
    %15 = vector.broadcast %7 : vector<16x1xf32> to vector<16x32xf32>
    %16 = arith.subf %1, %15 : vector<16x32xf32>
    %cst_8 = arith.constant 9.99999974E-6 : f32
    %17 = vector.broadcast %cst_8 : f32 to vector<16x1xf32>
    %18 = arith.addf %14, %17 : vector<16x1xf32>
    %19 = math.rsqrt %18 : vector<16x1xf32>
    %20 = vector.broadcast %19 : vector<16x1xf32> to vector<16x32xf32>
    %21 = arith.mulf %16, %20 : vector<16x32xf32>
    %c0_9 = arith.constant 0 : index
    %c0_10 = arith.constant 0 : index
    %22 = vector.load %arg3[%c0_9, %c0_10] : memref<1x32xf32, #tpu.memory_space<vmem>>, vector<1x32xf32>
    %23 = vector.broadcast %22 : vector<1x32xf32> to vector<16x32xf32>
    %24 = arith.mulf %21, %23 : vector<16x32xf32>
    %c0_11 = arith.constant 0 : index
    %c0_12 = arith.constant 0 : index
    %25 = vector.load %arg4[%c0_11, %c0_12] : memref<1x32xf32, #tpu.memory_space<vmem>>, vector<1x32xf32>
    %26 = vector.broadcast %25 : vector<1x32xf32> to vector<16x32xf32>
    %27 = arith.addf %24, %26 : vector<16x32xf32>
    %28 = arith.truncf %27 : vector<16x32xf32> to vector<16x32xbf16>
    %c0_13 = arith.constant 0 : index
    %c0_14 = arith.constant 0 : index
    %29 = vector.load %arg5[%c0_13, %c0_14] : memref<32x96xbf16, #tpu.memory_space<vmem>>, vector<32x96xbf16>
    %cst_15 = arith.constant dense<0.000000e+00> : vector<16x96xf32>
    %30 = tpu.matmul %28, %29, %cst_15 {dimension_numbers = #tpu.dot_dimension_numbers<[1], [0], [0], [1], [0, 0, 1, 1], [], []>} : vector<16x32xbf16>, vector<32x96xbf16>, vector<16x96xf32> -> vector<16x96xf32>
    %c0_16 = arith.constant 0 : index
    %c0_17 = arith.constant 0 : index
    %31 = vector.load %arg6[%c0_16, %c0_17] : memref<1x96xf32, #tpu.memory_space<vmem>>, vector<1x96xf32>
    %32 = vector.broadcast %31 : vector<1x96xf32> to vector<16x96xf32>
    %33 = arith.addf %30, %32 : vector<16x96xf32>
    %34 = vector.extract_strided_slice %33 {offsets = [0, 0], sizes = [16, 32], strides = [1, 1]} : vector<16x96xf32> to vector<16x32xf32>
    %35 = vector.extract_strided_slice %33 {offsets = [0, 32], sizes = [16, 32], strides = [1, 1]} : vector<16x96xf32> to vector<16x32xf32>
    %36 = vector.extract_strided_slice %33 {offsets = [0, 64], sizes = [16, 32], strides = [1, 1]} : vector<16x96xf32> to vector<16x32xf32>
    %37 = tpu.iota {dimensions = array<i32: 0>} : vector<8x8xi32>
    %38 = tpu.iota {dimensions = array<i32: 1>} : vector<8x8xi32>
    %39 = arith.cmpi sge, %37, %38 : vector<8x8xi32>
    %cst_18 = arith.constant 0.000000e+00 : f32
    %cst_19 = arith.constant -1.000000e+09 : f32
    %40 = vector.broadcast %cst_18 : f32 to vector<8x8xf32>
    %41 = vector.broadcast %cst_19 : f32 to vector<8x8xf32>
    %42 = arith.select %39, %40, %41 : vector<8x8xi1>, vector<8x8xf32>
    %43 = tpu.iota {dimensions = array<i32: 1>} : vector<8x32xi32>
    %c0_i32 = arith.constant 0 : i32
    %44 = vector.broadcast %c0_i32 : i32 to vector<8x32xi32>
    %45 = arith.cmpi sge, %43, %44 : vector<8x32xi32>
    %c8_i32 = arith.constant 8 : i32
    %46 = vector.broadcast %c8_i32 : i32 to vector<8x32xi32>
    %47 = arith.cmpi slt, %43, %46 : vector<8x32xi32>
    %48 = arith.andi %45, %47 : vector<8x32xi1>
    %49 = arith.extui %48 : vector<8x32xi1> to vector<8x32xi32>
    %50 = arith.sitofp %49 : vector<8x32xi32> to vector<8x32xf32>
    %c8_i32_20 = arith.constant 8 : i32
    %51 = vector.broadcast %c8_i32_20 : i32 to vector<8x32xi32>
    %52 = arith.cmpi sge, %43, %51 : vector<8x32xi32>
    %c16_i32 = arith.constant 16 : i32
    %53 = vector.broadcast %c16_i32 : i32 to vector<8x32xi32>
    %54 = arith.cmpi slt, %43, %53 : vector<8x32xi32>
    %55 = arith.andi %52, %54 : vector<8x32xi1>
    %56 = arith.extui %55 : vector<8x32xi1> to vector<8x32xi32>
    %57 = arith.sitofp %56 : vector<8x32xi32> to vector<8x32xf32>
    %c16_i32_21 = arith.constant 16 : i32
    %58 = vector.broadcast %c16_i32_21 : i32 to vector<8x32xi32>
    %59 = arith.cmpi sge, %43, %58 : vector<8x32xi32>
    %c24_i32 = arith.constant 24 : i32
    %60 = vector.broadcast %c24_i32 : i32 to vector<8x32xi32>
    %61 = arith.cmpi slt, %43, %60 : vector<8x32xi32>
    %62 = arith.andi %59, %61 : vector<8x32xi1>
    %63 = arith.extui %62 : vector<8x32xi1> to vector<8x32xi32>
    %64 = arith.sitofp %63 : vector<8x32xi32> to vector<8x32xf32>
    %c24_i32_22 = arith.constant 24 : i32
    %65 = vector.broadcast %c24_i32_22 : i32 to vector<8x32xi32>
    %66 = arith.cmpi sge, %43, %65 : vector<8x32xi32>
    %c32_i32 = arith.constant 32 : i32
    %67 = vector.broadcast %c32_i32 : i32 to vector<8x32xi32>
    %68 = arith.cmpi slt, %43, %67 : vector<8x32xi32>
    %69 = arith.andi %66, %68 : vector<8x32xi1>
    %70 = arith.extui %69 : vector<8x32xi1> to vector<8x32xi32>
    %71 = arith.sitofp %70 : vector<8x32xi32> to vector<8x32xf32>
    %72 = vector.shape_cast %50 : vector<8x32xf32> to vector<1x8x32xf32>
    %73 = vector.shape_cast %57 : vector<8x32xf32> to vector<1x8x32xf32>
    %74 = vector.shape_cast %64 : vector<8x32xf32> to vector<1x8x32xf32>
    %75 = vector.shape_cast %71 : vector<8x32xf32> to vector<1x8x32xf32>
    %76 = tpu.concatenate %72, %73, %74, %75 in 0 : vector<1x8x32xf32>, vector<1x8x32xf32>, vector<1x8x32xf32>, vector<1x8x32xf32> -> vector<4x8x32xf32>
    %77 = vector.extract_strided_slice %34 {offsets = [0, 0], sizes = [8, 32], strides = [1, 1]} : vector<16x32xf32> to vector<8x32xf32>
    %78 = vector.extract_strided_slice %35 {offsets = [0, 0], sizes = [8, 32], strides = [1, 1]} : vector<16x32xf32> to vector<8x32xf32>
    %79 = vector.extract_strided_slice %36 {offsets = [0, 0], sizes = [8, 32], strides = [1, 1]} : vector<16x32xf32> to vector<8x32xf32>
    %80 = vector.shape_cast %77 : vector<8x32xf32> to vector<1x8x32xf32>
    %81 = vector.broadcast %80 : vector<1x8x32xf32> to vector<4x8x32xf32>
    %82 = arith.mulf %81, %76 : vector<4x8x32xf32>
    %83 = vector.shape_cast %82 : vector<4x8x32xf32> to vector<32x32xf32>
    %84 = arith.truncf %83 : vector<32x32xf32> to vector<32x32xbf16>
    %85 = arith.truncf %78 : vector<8x32xf32> to vector<8x32xbf16>
    %cst_23 = arith.constant dense<0.000000e+00> : vector<32x8xf32>
    %86 = tpu.matmul %84, %85, %cst_23 {dimension_numbers = #tpu.dot_dimension_numbers<[1], [1], [0], [0], [0, 0, 1, 0], [], []>} : vector<32x32xbf16>, vector<8x32xbf16>, vector<32x8xf32> -> vector<32x8xf32>
    %cst_24 = arith.constant 0.353553385 : f32
    %87 = vector.broadcast %cst_24 : f32 to vector<32x8xf32>
    %88 = arith.mulf %86, %87 : vector<32x8xf32>
    %89 = vector.shape_cast %88 : vector<32x8xf32> to vector<4x8x8xf32>
    %90 = vector.shape_cast %42 : vector<8x8xf32> to vector<1x8x8xf32>
    %91 = vector.broadcast %90 : vector<1x8x8xf32> to vector<4x8x8xf32>
    %92 = arith.addf %89, %91 : vector<4x8x8xf32>
    %cst_25 = arith.constant dense<0xFF800000> : vector<4x8xf32>
    %93 = vector.multi_reduction <maximumf>, %92, %cst_25 [2] : vector<4x8x8xf32> to vector<4x8xf32>
    %94 = vector.shape_cast %93 : vector<4x8xf32> to vector<4x8x1xf32>
    %95 = vector.broadcast %94 : vector<4x8x1xf32> to vector<4x8x8xf32>
    %96 = arith.subf %92, %95 : vector<4x8x8xf32>
    %97 = math.exp %96 : vector<4x8x8xf32>
    %cst_26 = arith.constant dense<0.000000e+00> : vector<4x8xf32>
    %98 = vector.multi_reduction <add>, %97, %cst_26 [2] : vector<4x8x8xf32> to vector<4x8xf32>
    %99 = vector.shape_cast %98 : vector<4x8xf32> to vector<4x8x1xf32>
    %100 = tpu.reciprocal %99 {approx = true} : vector<4x8x1xf32> -> vector<4x8x1xf32>
    %101 = vector.broadcast %100 : vector<4x8x1xf32> to vector<4x8x8xf32>
    %102 = arith.mulf %97, %101 : vector<4x8x8xf32>
    %103 = vector.shape_cast %102 : vector<4x8x8xf32> to vector<32x8xf32>
    %104 = arith.truncf %103 : vector<32x8xf32> to vector<32x8xbf16>
    %105 = arith.truncf %79 : vector<8x32xf32> to vector<8x32xbf16>
    %cst_27 = arith.constant dense<0.000000e+00> : vector<32x32xf32>
    %106 = tpu.matmul %104, %105, %cst_27 {dimension_numbers = #tpu.dot_dimension_numbers<[1], [0], [0], [1], [0, 0, 1, 1], [], []>} : vector<32x8xbf16>, vector<8x32xbf16>, vector<32x32xf32> -> vector<32x32xf32>
    %107 = vector.shape_cast %106 : vector<32x32xf32> to vector<4x8x32xf32>
    %108 = arith.mulf %107, %76 : vector<4x8x32xf32>
    %109 = vector.extract_strided_slice %108 {offsets = [0, 0, 0], sizes = [1, 8, 32], strides = [1, 1, 1]} : vector<4x8x32xf32> to vector<1x8x32xf32>
    %110 = vector.shape_cast %109 : vector<1x8x32xf32> to vector<8x32xf32>
    %111 = vector.extract_strided_slice %108 {offsets = [1, 0, 0], sizes = [1, 8, 32], strides = [1, 1, 1]} : vector<4x8x32xf32> to vector<1x8x32xf32>
    %112 = vector.shape_cast %111 : vector<1x8x32xf32> to vector<8x32xf32>
    %113 = arith.addf %110, %112 : vector<8x32xf32>
    %114 = vector.extract_strided_slice %108 {offsets = [2, 0, 0], sizes = [1, 8, 32], strides = [1, 1, 1]} : vector<4x8x32xf32> to vector<1x8x32xf32>
    %115 = vector.shape_cast %114 : vector<1x8x32xf32> to vector<8x32xf32>
    %116 = arith.addf %113, %115 : vector<8x32xf32>
    %117 = vector.extract_strided_slice %108 {offsets = [3, 0, 0], sizes = [1, 8, 32], strides = [1, 1, 1]} : vector<4x8x32xf32> to vector<1x8x32xf32>
    %118 = vector.shape_cast %117 : vector<1x8x32xf32> to vector<8x32xf32>
    %119 = arith.addf %116, %118 : vector<8x32xf32>
    %120 = vector.extract_strided_slice %34 {offsets = [8, 0], sizes = [8, 32], strides = [1, 1]} : vector<16x32xf32> to vector<8x32xf32>
    %121 = vector.extract_strided_slice %35 {offsets = [8, 0], sizes = [8, 32], strides = [1, 1]} : vector<16x32xf32> to vector<8x32xf32>
    %122 = vector.extract_strided_slice %36 {offsets = [8, 0], sizes = [8, 32], strides = [1, 1]} : vector<16x32xf32> to vector<8x32xf32>
    %123 = vector.shape_cast %120 : vector<8x32xf32> to vector<1x8x32xf32>
    %124 = vector.broadcast %123 : vector<1x8x32xf32> to vector<4x8x32xf32>
    %125 = arith.mulf %124, %76 : vector<4x8x32xf32>
    %126 = vector.shape_cast %125 : vector<4x8x32xf32> to vector<32x32xf32>
    %127 = arith.truncf %126 : vector<32x32xf32> to vector<32x32xbf16>
    %128 = arith.truncf %121 : vector<8x32xf32> to vector<8x32xbf16>
    %cst_28 = arith.constant dense<0.000000e+00> : vector<32x8xf32>
    %129 = tpu.matmul %127, %128, %cst_28 {dimension_numbers = #tpu.dot_dimension_numbers<[1], [1], [0], [0], [0, 0, 1, 0], [], []>} : vector<32x32xbf16>, vector<8x32xbf16>, vector<32x8xf32> -> vector<32x8xf32>
    %cst_29 = arith.constant 0.353553385 : f32
    %130 = vector.broadcast %cst_29 : f32 to vector<32x8xf32>
    %131 = arith.mulf %129, %130 : vector<32x8xf32>
    %132 = vector.shape_cast %131 : vector<32x8xf32> to vector<4x8x8xf32>
    %133 = vector.shape_cast %42 : vector<8x8xf32> to vector<1x8x8xf32>
    %134 = vector.broadcast %133 : vector<1x8x8xf32> to vector<4x8x8xf32>
    %135 = arith.addf %132, %134 : vector<4x8x8xf32>
    %cst_30 = arith.constant dense<0xFF800000> : vector<4x8xf32>
    %136 = vector.multi_reduction <maximumf>, %135, %cst_30 [2] : vector<4x8x8xf32> to vector<4x8xf32>
    %137 = vector.shape_cast %136 : vector<4x8xf32> to vector<4x8x1xf32>
    %138 = vector.broadcast %137 : vector<4x8x1xf32> to vector<4x8x8xf32>
    %139 = arith.subf %135, %138 : vector<4x8x8xf32>
    %140 = math.exp %139 : vector<4x8x8xf32>
    %cst_31 = arith.constant dense<0.000000e+00> : vector<4x8xf32>
    %141 = vector.multi_reduction <add>, %140, %cst_31 [2] : vector<4x8x8xf32> to vector<4x8xf32>
    %142 = vector.shape_cast %141 : vector<4x8xf32> to vector<4x8x1xf32>
    %143 = tpu.reciprocal %142 {approx = true} : vector<4x8x1xf32> -> vector<4x8x1xf32>
    %144 = vector.broadcast %143 : vector<4x8x1xf32> to vector<4x8x8xf32>
    %145 = arith.mulf %140, %144 : vector<4x8x8xf32>
    %146 = vector.shape_cast %145 : vector<4x8x8xf32> to vector<32x8xf32>
    %147 = arith.truncf %146 : vector<32x8xf32> to vector<32x8xbf16>
    %148 = arith.truncf %122 : vector<8x32xf32> to vector<8x32xbf16>
    %cst_32 = arith.constant dense<0.000000e+00> : vector<32x32xf32>
    %149 = tpu.matmul %147, %148, %cst_32 {dimension_numbers = #tpu.dot_dimension_numbers<[1], [0], [0], [1], [0, 0, 1, 1], [], []>} : vector<32x8xbf16>, vector<8x32xbf16>, vector<32x32xf32> -> vector<32x32xf32>
    %150 = vector.shape_cast %149 : vector<32x32xf32> to vector<4x8x32xf32>
    %151 = arith.mulf %150, %76 : vector<4x8x32xf32>
    %152 = vector.extract_strided_slice %151 {offsets = [0, 0, 0], sizes = [1, 8, 32], strides = [1, 1, 1]} : vector<4x8x32xf32> to vector<1x8x32xf32>
    %153 = vector.shape_cast %152 : vector<1x8x32xf32> to vector<8x32xf32>
    %154 = vector.extract_strided_slice %151 {offsets = [1, 0, 0], sizes = [1, 8, 32], strides = [1, 1, 1]} : vector<4x8x32xf32> to vector<1x8x32xf32>
    %155 = vector.shape_cast %154 : vector<1x8x32xf32> to vector<8x32xf32>
    %156 = arith.addf %153, %155 : vector<8x32xf32>
    %157 = vector.extract_strided_slice %151 {offsets = [2, 0, 0], sizes = [1, 8, 32], strides = [1, 1, 1]} : vector<4x8x32xf32> to vector<1x8x32xf32>
    %158 = vector.shape_cast %157 : vector<1x8x32xf32> to vector<8x32xf32>
    %159 = arith.addf %156, %158 : vector<8x32xf32>
    %160 = vector.extract_strided_slice %151 {offsets = [3, 0, 0], sizes = [1, 8, 32], strides = [1, 1, 1]} : vector<4x8x32xf32> to vector<1x8x32xf32>
    %161 = vector.shape_cast %160 : vector<1x8x32xf32> to vector<8x32xf32>
    %162 = arith.addf %159, %161 : vector<8x32xf32>
    %163 = tpu.concatenate %119, %162 in 0 : vector<8x32xf32>, vector<8x32xf32> -> vector<16x32xf32>
    %164 = arith.truncf %163 : vector<16x32xf32> to vector<16x32xbf16>
    %c0_33 = arith.constant 0 : index
    %c0_34 = arith.constant 0 : index
    %165 = vector.load %arg7[%c0_33, %c0_34] : memref<32x32xbf16, #tpu.memory_space<vmem>>, vector<32x32xbf16>
    %cst_35 = arith.constant dense<0.000000e+00> : vector<16x32xf32>
    %166 = tpu.matmul %164, %165, %cst_35 {dimension_numbers = #tpu.dot_dimension_numbers<[1], [0], [0], [1], [0, 0, 1, 1], [], []>} : vector<16x32xbf16>, vector<32x32xbf16>, vector<16x32xf32> -> vector<16x32xf32>
    %c0_36 = arith.constant 0 : index
    %c0_37 = arith.constant 0 : index
    %167 = vector.load %arg8[%c0_36, %c0_37] : memref<1x32xf32, #tpu.memory_space<vmem>>, vector<1x32xf32>
    %168 = vector.broadcast %167 : vector<1x32xf32> to vector<16x32xf32>
    %169 = arith.addf %166, %168 : vector<16x32xf32>
    %170 = arith.truncf %169 : vector<16x32xf32> to vector<16x32xbf16>
    %c0_38 = arith.constant 0 : index
    %c0_39 = arith.constant 0 : index
    %171 = vector.load %arg9[%c0_38, %c0_39] : memref<32x32xbf16, #tpu.memory_space<vmem>>, vector<32x32xbf16>
    %cst_40 = arith.constant dense<0.000000e+00> : vector<16x32xf32>
    %172 = tpu.matmul %170, %171, %cst_40 {dimension_numbers = #tpu.dot_dimension_numbers<[1], [0], [0], [1], [0, 0, 1, 1], [], []>} : vector<16x32xbf16>, vector<32x32xbf16>, vector<16x32xf32> -> vector<16x32xf32>
    %173 = arith.truncf %3 : vector<16x16xf32> to vector<16x16xbf16>
    %c0_41 = arith.constant 0 : index
    %c0_42 = arith.constant 0 : index
    %174 = vector.load %arg10[%c0_41, %c0_42] : memref<16x32xbf16, #tpu.memory_space<vmem>>, vector<16x32xbf16>
    %cst_43 = arith.constant dense<0.000000e+00> : vector<16x32xf32>
    %175 = tpu.matmul %173, %174, %cst_43 {dimension_numbers = #tpu.dot_dimension_numbers<[1], [0], [0], [1], [0, 0, 1, 1], [], []>} : vector<16x16xbf16>, vector<16x32xbf16>, vector<16x32xf32> -> vector<16x32xf32>
    %176 = arith.addf %172, %175 : vector<16x32xf32>
    %c0_44 = arith.constant 0 : index
    %c0_45 = arith.constant 0 : index
    %177 = vector.load %arg11[%c0_44, %c0_45] : memref<1x32xf32, #tpu.memory_space<vmem>>, vector<1x32xf32>
    %178 = vector.broadcast %177 : vector<1x32xf32> to vector<16x32xf32>
    %179 = arith.addf %176, %178 : vector<16x32xf32>
    %cst_46 = arith.constant 0.000000e+00 : f32
    %180 = vector.broadcast %cst_46 : f32 to vector<16x32xf32>
    %181 = arith.maximumf %179, %180 : vector<16x32xf32>
    %182 = arith.truncf %181 : vector<16x32xf32> to vector<16x32xbf16>
    %c0_47 = arith.constant 0 : index
    %c0_48 = arith.constant 0 : index
    %183 = vector.load %arg12[%c0_47, %c0_48] : memref<32x32xbf16, #tpu.memory_space<vmem>>, vector<32x32xbf16>
    %cst_49 = arith.constant dense<0.000000e+00> : vector<16x32xf32>
    %184 = tpu.matmul %182, %183, %cst_49 {dimension_numbers = #tpu.dot_dimension_numbers<[1], [0], [0], [1], [0, 0, 1, 1], [], []>} : vector<16x32xbf16>, vector<32x32xbf16>, vector<16x32xf32> -> vector<16x32xf32>
    %c0_50 = arith.constant 0 : index
    %c0_51 = arith.constant 0 : index
    %185 = vector.load %arg13[%c0_50, %c0_51] : memref<1x32xf32, #tpu.memory_space<vmem>>, vector<1x32xf32>
    %186 = vector.broadcast %185 : vector<1x32xf32> to vector<16x32xf32>
    %187 = arith.addf %184, %186 : vector<16x32xf32>
    %188 = arith.addf %1, %169 : vector<16x32xf32>
    %189 = arith.addf %188, %187 : vector<16x32xf32>
    %190 = vector.shape_cast %189 : vector<16x32xf32> to vector<2x8x32xf32>
    %c0_52 = arith.constant 0 : index
    %c0_53 = arith.constant 0 : index
    %c0_54 = arith.constant 0 : index
    %191 = vector.load %arg14[%c0_52, %c0_53, %c0_54] : memref<2x8x32xf32, #tpu.memory_space<vmem>>, vector<2x8x32xf32>
    tpu.vector_store %arg14[%c0_52, %c0_53, %c0_54], %190 {strides = array<i32>} : memref<2x8x32xf32, #tpu.memory_space<vmem>>, vector<2x8x32xf32>,
    return
  }
  func.func @transform_0(%arg0: i32) -> (i32, i32, i32) {
    %c0_i32 = arith.constant 0 : i32
    %c0_i32_0 = arith.constant 0 : i32
    %c0_i32_1 = arith.constant 0 : i32
    return %arg0, %c0_i32, %c0_i32_0 : i32, i32, i32
  }
  func.func @transform_1(%arg0: i32) -> (i32, i32, i32) {
    %c0_i32 = arith.constant 0 : i32
    %c0_i32_0 = arith.constant 0 : i32
    %c0_i32_1 = arith.constant 0 : i32
    return %arg0, %c0_i32, %c0_i32_0 : i32, i32, i32
  }
  func.func @transform_2(%arg0: i32) -> (i32, i32) {
    %c0_i32 = arith.constant 0 : i32
    %c0_i32_0 = arith.constant 0 : i32
    %c0_i32_1 = arith.constant 0 : i32
    return %c0_i32, %c0_i32_0 : i32, i32
  }
  func.func @transform_3(%arg0: i32) -> (i32, i32) {
    %c0_i32 = arith.constant 0 : i32
    %c0_i32_0 = arith.constant 0 : i32
    %c0_i32_1 = arith.constant 0 : i32
    return %c0_i32, %c0_i32_0 : i32, i32
  }
  func.func @transform_4(%arg0: i32) -> (i32, i32) {
    %c0_i32 = arith.constant 0 : i32
    %c0_i32_0 = arith.constant 0 : i32
    %c0_i32_1 = arith.constant 0 : i32
    return %c0_i32, %c0_i32_0 : i32, i32
  }
  func.func @transform_5(%arg0: i32) -> (i32, i32) {
    %c0_i32 = arith.constant 0 : i32
    %c0_i32_0 = arith.constant 0 : i32
    %c0_i32_1 = arith.constant 0 : i32
    return %c0_i32, %c0_i32_0 : i32, i32
  }
  func.func @transform_6(%arg0: i32) -> (i32, i32) {
    %c0_i32 = arith.constant 0 : i32
    %c0_i32_0 = arith.constant 0 : i32
    %c0_i32_1 = arith.constant 0 : i32
    return %c0_i32, %c0_i32_0 : i32, i32
  }
  func.func @transform_7(%arg0: i32) -> (i32, i32) {
    %c0_i32 = arith.constant 0 : i32
    %c0_i32_0 = arith.constant 0 : i32
    %c0_i32_1 = arith.constant 0 : i32
    return %c0_i32, %c0_i32_0 : i32, i32
  }
  func.func @transform_8(%arg0: i32) -> (i32, i32) {
    %c0_i32 = arith.constant 0 : i32
    %c0_i32_0 = arith.constant 0 : i32
    %c0_i32_1 = arith.constant 0 : i32
    return %c0_i32, %c0_i32_0 : i32, i32
  }
  func.func @transform_9(%arg0: i32) -> (i32, i32) {
    %c0_i32 = arith.constant 0 : i32
    %c0_i32_0 = arith.constant 0 : i32
    %c0_i32_1 = arith.constant 0 : i32
    return %c0_i32, %c0_i32_0 : i32, i32
  }
  func.func @transform_10(%arg0: i32) -> (i32, i32) {
    %c0_i32 = arith.constant 0 : i32
    %c0_i32_0 = arith.constant 0 : i32
    %c0_i32_1 = arith.constant 0 : i32
    return %c0_i32, %c0_i32_0 : i32, i32
  }
  func.func @transform_11(%arg0: i32) -> (i32, i32) {
    %c0_i32 = arith.constant 0 : i32
    %c0_i32_0 = arith.constant 0 : i32
    %c0_i32_1 = arith.constant 0 : i32
    return %c0_i32, %c0_i32_0 : i32, i32
  }
  func.func @transform_12(%arg0: i32) -> (i32, i32) {
    %c0_i32 = arith.constant 0 : i32
    %c0_i32_0 = arith.constant 0 : i32
    %c0_i32_1 = arith.constant 0 : i32
    return %c0_i32, %c0_i32_0 : i32, i32
  }
  func.func @transform_13(%arg0: i32) -> (i32, i32, i32) {
    %c0_i32 = arith.constant 0 : i32
    %c0_i32_0 = arith.constant 0 : i32
    %c0_i32_1 = arith.constant 0 : i32
    return %arg0, %c0_i32, %c0_i32_0 : i32, i32, i32
  }
}

</mosaic_0001>

<bundles_post_ra>
// kernel: tpu_custom_call.1
= control target key start
LH: loop header
LB: loop body
LE: loop exit
PB: predicated region body
PF: predicated region fallthrough
CT: control target
= control target key end

     0   :  { %18 = vsyncpa [#allocation3], 0  ;;  %s1398_s0 = inlined_call_operand.hbm [shape: f32[2,8,32], index: 0, kind: input, shape index: {}]   ;;  %s1399_s1 = inlined_call_operand.hbm [shape: f32[2,8,16], index: 1, kind: input, shape index: {}]   ;;  %s1400_s2 = inlined_call_operand.hbm [shape: f32[1,32], index: 2, kind: input, shape index: {}]   ;;  %s1401_s3 = inlined_call_operand.hbm [shape: f32[1,32], index: 3, kind: input, shape index: {}]   ;;  %s1402_s4 = inlined_call_operand.hbm [shape: bf16[32,96], index: 4, kind: input, shape index: {}]   ;;  %s1403_s5 = inlined_call_operand.hbm [shape: f32[1,96], index: 5, kind: input, shape index: {}]   ;;  %s1404_s6 = inlined_call_operand.hbm [shape: bf16[32,32], index: 6, kind: input, shape index: {}]   ;;  %s1405_s7 = inlined_call_operand.hbm [shape: f32[1,32], index: 7, kind: input, shape index: {}]   ;;  %s1406_s8 = inlined_call_operand.hbm [shape: bf16[32,32], index: 8, kind: input, shape index: {}]   ;;  %s1407_s9 = inlined_call_operand.vmem [shape: bf16[16,32], index: 9, kind: input, shape index: {}]   ;;  %s1408_s10 = inlined_call_operand.vmem [shape: f32[1,32], index: 10, kind: input, shape index: {}]   ;;  %s1409_s11 = inlined_call_operand.hbm [shape: bf16[32,32], index: 11, kind: input, shape index: {}]   ;;  %s1410_s12 = inlined_call_operand.vmem [shape: f32[1,32], index: 12, kind: input, shape index: {}]   ;;  %s1411_s13 = inlined_call_operand.hbm [shape: f32[2,8,32], index: 13, kind: output, shape index: {}]  }
   0x1   :  { %19 = vsyncpa [#allocation6], 0 }
   0x2   :  { %20 = vsyncpa [#allocation9], 0 }
   0x3   :  { %21 = vsyncpa [#allocation12], 0 }
   0x4   :  { %22 = vsyncpa [#allocation15], 0 }
   0x5   :  { %23 = vsyncpa [#allocation18], 0 }
   0x6   :  { %24 = vsyncpa [#allocation4], 0  ;;  %s42_s27 = sshll.u32 %s1399_s1, 4  ;;  %s1164_s28 = smov [#allocation5]   ;;  %s43_s27 = int_to_ptr.hbm [resolvable:$true] %s42_s27 }
   0x7   :  { %s44_s29 = sshll.u32 %s1164_s28, 4  ;;  %s67_s15 = sshll.u32 %s1401_s3, 4  ;;  %s45_s29 = int_to_ptr.vmem [resolvable:$true] %s44_s29  ;;  %s68_s15 = int_to_ptr.hbm [resolvable:$true] %s67_s15 }
   0x8   :  { %s1165_s16 = smov 128   ;;  %s1166_s17 = smov 8  }
   0x9   :  { %50 = dma.hbm_to_vmem [thread:$0]  %s43_s27, 256, %s45_s29, [#allocation6], %s1165_s16, %s1165_s16, %s1166_s17  }
   0xa   :  { %s1167_s18 = smov [#allocation8]   ;;  %s91_s1 = sshll.u32 %s1403_s5, 4  ;;  %s92_s1 = int_to_ptr.hbm [resolvable:$true] %s91_s1 }
   0xb   :  { %s69_s19 = sshll.u32 %s1167_s18, 4  ;;  %s115_s3 = sshll.u32 %s1405_s7, 4  ;;  %s70_s19 = int_to_ptr.vmem [resolvable:$true] %s69_s19  ;;  %s116_s3 = int_to_ptr.hbm [resolvable:$true] %s115_s3 }
   0xc   :  { %72 = dma.hbm_to_vmem [thread:$0]  %s68_s15, 16, %s70_s19, [#allocation9]  }
   0xd   :  { %s1168_s24 = smov [#allocation11]   ;;  %s1169_s26 = smov [#allocation14]  }
   0xe   :  { %s93_s25 = sshll.u32 %s1168_s24, 4  ;;  %s117_s27 = sshll.u32 %s1169_s26, 4  ;;  %s94_s25 = int_to_ptr.vmem [resolvable:$true] %s93_s25  ;;  %s118_s27 = int_to_ptr.vmem [resolvable:$true] %s117_s27 }
   0xf   :  { %96 = dma.hbm_to_vmem [thread:$0]  %s92_s1, 16, %s94_s25, [#allocation12]  }
  0x10   :  { %s29_s30 = sshll.u32 %s1398_s0, 4  ;;  %s56_s15 = sshll.u32 %s1400_s2, 4  ;;  %s30_s30 = int_to_ptr.hbm [resolvable:$true] %s29_s30  ;;  %s57_s15 = int_to_ptr.hbm [resolvable:$true] %s56_s15 }
  0x11   :  { %120 = dma.hbm_to_vmem [thread:$0]  %s116_s3, 16, %s118_s27, [#allocation15]  }
  0x12   :  { %s1170_s18 = smov [#allocation2]   ;;  %s1171_s19 = smov [#allocation7]  }
  0x13   :  { %s31_s7 = sshll.u32 %s1170_s18, 4  ;;  %s58_s20 = sshll.u32 %s1171_s19, 4  ;;  %s32_s7 = int_to_ptr.vmem [resolvable:$true] %s31_s7  ;;  %s59_s20 = int_to_ptr.vmem [resolvable:$true] %s58_s20 }
  0x14   :  { %37 = dma.hbm_to_vmem [thread:$0]  %s30_s30, 256, %s32_s7, [#allocation3], %s1165_s16, %s1165_s16, %s1166_s17  }
  0x15   :  { %s77_s0 = sshll.u32 %s1402_s4, 4  ;;  %s1172_s22 = smov [#allocation10]   ;;  %s78_s0 = int_to_ptr.hbm [resolvable:$true] %s77_s0 }
  0x16   :  { %61 = dma.hbm_to_vmem [thread:$0]  %s57_s15, 16, %s59_s20, [#allocation6]  }
  0x17   :  { %s79_s23 = sshll.u32 %s1172_s22, 4  ;;  %s101_s24 = sshll.u32 %s1404_s6, 4  ;;  %s80_s23 = int_to_ptr.vmem [resolvable:$true] %s79_s23  ;;  %s102_s24 = int_to_ptr.hbm [resolvable:$true] %s101_s24 }
  0x18   :  { %s1173_s25 = smov 64   ;;  %s1174_s26 = smov 4  }
  0x19   :  { %85 = dma.hbm_to_vmem [thread:$0]  %s78_s0, 256, %s80_s23, [#allocation9], %s1173_s25, %s1173_s25, %s1174_s26  }
  0x1a   :  { %s1175_s27 = smov [#allocation13]   ;;  %s125_s30 = sshll.u32 %s1406_s8, 4  ;;  %s126_s30 = int_to_ptr.hbm [resolvable:$true] %s125_s30 }
  0x1b   :  { %s103_s28 = sshll.u32 %s1175_s27, 4  ;;  %s142_s6 = sshll.u32 %s1409_s11, 4  ;;  %s104_s28 = int_to_ptr.vmem [resolvable:$true] %s103_s28  ;;  %s143_s6 = int_to_ptr.hbm [resolvable:$true] %s142_s6 }
  0x1c   :  { %109 = dma.hbm_to_vmem [thread:$0]  %s102_s24, 256, %s104_s28, [#allocation12], %s1173_s25, %s1173_s25, %s1174_s26  }
  0x1d   :  { %s1176_s15 = smov [#allocation16]   ;;  %s1177_s7 = smov [#allocation17]  }
  0x1e   :  { %s127_s18 = sshll.u32 %s1176_s15, 4  ;;  %s144_s19 = sshll.u32 %s1177_s7, 4  ;;  %s128_s18 = int_to_ptr.vmem [resolvable:$true] %s127_s18  ;;  %s145_s19 = int_to_ptr.vmem [resolvable:$true] %s144_s19 }
  0x1f   :  { %133 = dma.hbm_to_vmem [thread:$0]  %s126_s30, 256, %s128_s18, [#allocation15], %s1173_s25, %s1173_s25, %s1174_s26  }
  0x20   :  { %150 = dma.hbm_to_vmem [thread:$0]  %s143_s6, 256, %s145_s19, [#allocation18], %s1173_s25, %s1173_s25, %s1174_s26  }
  0x21   :  { %1150 = dma.done.wait [#allocation3], 256  }
  0x22   :  { %1151 = vsyncadd [#allocation3], 4294967040 }
  0x23   :  { %1152 = dma.done.wait [#allocation6], 272  }
  0x24   :  { %1153 = vsyncadd [#allocation6], 4294967024 }
  0x25   :  { %1154 = dma.done.wait [#allocation9], 272  }
  0x26   :  { %1155 = vsyncadd [#allocation9], 4294967024 }
  0x27   :  { %1156 = dma.done.wait [#allocation12], 272  }
  0x28   :  { %1157 = vsyncadd [#allocation12], 4294967024 }
  0x29   :  { %1158 = dma.done.wait [#allocation15], 272  }
  0x2a   :  { %1159 = vsyncadd [#allocation15], 4294967024 }
  0x2b   :  { %1160 = dma.done.wait [#allocation18], 256  }
  0x2c   :  { %1161 = vsyncadd [#allocation18], 4294967040  ;;  %vm198_vm0 = vcmask 261120   ;;  %v1297_v0 = vld [vmem:[#allocation2] sm:$0xff]  ;;  %v1301_v2 = vld [vmem:[#allocation2 + $0x8] sm:$0xff]  ;;  %v1178_v4 = vmov 32.0   ;;  %v300_v59 = vlaneseq }
  0x2d   :  { %v199_v1 = vsel %vm198_vm0, %v1297_v0, 0.0  ;;  %v202_v3 = vsel %vm198_vm0, %v1301_v2, 0.0  ;;  %848 = vrcp.f32 %v1178_v4  ;;  %v815_v21 = vld [vmem:[#allocation10 + $0x8] sm:$0xff]  ;;  %v814_v23 = vld [vmem:[#allocation10] sm:$0xff]  ;;  %v842_v42 = vld [vmem:[#allocation7] ss:$0 sm:$0xff] }
  0x2e   :  { %200 = vadd.xlane.f32.xlu0 %v199_v1  ;;  %292 = vmatpush.bf16.msra.mxu0 %v815_v21  ;;  %v843_v47 = vld [vmem:[#allocation8] ss:$0 sm:$0xff]  ;;  %v844_v52 = vld [vmem:[#allocation11] ss:$0 sm:$0xff]  ;;  %s1179_s8 = smov 96   ;;  %v303_v60 = vand.u32 127, %v300_v59 }
  0x2f   :  { %v1180_v62 = vmov 0.0   ;;  %s743_s3 = sshll.u32 %s1411_s13, 4  ;;  %s744_s3 = int_to_ptr.hbm [resolvable:$true] %s743_s3 }
  0x30   :  { %vm311_vm8 = vcmp.ge.s32.totalorder %v303_v60, 8  ;;  %vm312_vm9 = vcmp.lt.s32.totalorder %v303_v60, 16  ;;  %vm307_vm10 = vcmp.lt.s32.totalorder %v303_v60, 8  ;;  %vm316_vm12 = vcmp.ge.s32.totalorder %v303_v60, 16 }
  0x31   :  { %vm313_vm11 = vmand %vm311_vm8, %vm312_vm9  ;;  %v1316_v63 = vsel %vm307_vm10, 1.0, %v1180_v62  ;;  %vm317_vm13 = vcmp.lt.s32.totalorder %v303_v60, 24  ;;  %vm321_vm14 = vcmp.ge.s32.totalorder %v303_v60, 24  ;;  %vm322_vm15 = vcmp.lt.s32.totalorder %v303_v60, 32 }
  0x32   :  { %293 = vmatpush.bf16.msra.mxu0 %v814_v23  ;;  %v1318_v1 = vsel %vm313_vm11, 1.0, %v1180_v62 }
  0x33   :  { %v849_v5 = vpop.eup %848 }
  0x34   :  { %v206_v6 = vmul.f32 32.0, %v849_v5  ;;  %vm210_vm1 = vweird.f32 %v849_v5 }
  0x36   :  { %203 = vadd.xlane.f32.xlu0 %v202_v3  ;;  %v207_v7 = vsub.f32 1.0, %v206_v6 }
  0x38   :  { %v208_v8 = vmul.f32 %v849_v5, %v207_v7 }
  0x3a   :  { %v209_v9 = vadd.f32 %v849_v5, %v208_v8 }
  0x3c   :  { %v211_v10 = vsel %vm210_vm1, %v849_v5, %v209_v9  ;;  %vm318_vm1 = vmand %vm316_vm12, %vm317_vm13 }
  0xa1   :  { %v201_v11 = vpop.xlane.xlu0 %200 }
  0xa2   :  { %v212_v12 = vmul.f32 %v211_v10, %v201_v11 }
  0xa4   :  { %v214_v13 = vsub.f32 %v1297_v0, %v212_v12  ;;  %v1327_v12 = vsel %vm318_vm1, 1.0, %v1180_v62 }
  0xa6   :  { %v216_v14 = vmul.f32 %v214_v13, %v214_v13 }
  0xa8   :  { %v218_v15 = vsel %vm198_vm0, %v216_v14, 0.0 }
  0xa9   :  { %219 = vadd.xlane.f32.xlu1 %v218_v15  ;;  %v204_v16 = vpop.xlane.xlu0 %203 }
  0xaa   :  { %v213_v17 = vmul.f32 %v211_v10, %v204_v16 }
  0xac   :  { %v215_v18 = vsub.f32 %v1301_v2, %v213_v17 }
  0xae   :  { %v217_v19 = vmul.f32 %v215_v18, %v215_v18 }
  0xb0   :  { %v221_v20 = vsel %vm198_vm0, %v217_v19, 0.0 }
  0xb1   :  { %222 = vadd.xlane.f32.xlu1 %v221_v20  ;;  %v301_v20 = vshrl.u32 %v300_v59, 7 }
 0x11c   :  { %v220_v22 = vpop.xlane.xlu1 %219 }
 0x11d   :  { %v224_v24 = vmul.f32 %v220_v22, %v211_v10  ;;  %v1181_v22 = vmov -1e+09  }
 0x11f   :  { %v226_v25 = vadd.f32 1e-05, %v224_v24 }
 0x121   :  { %850 = vrsqrt.f32 %v226_v25  ;;  %vm234_vm3 = vweird.f32 %v226_v25 }
 0x124   :  { %v223_v26 = vpop.xlane.xlu1 %222 }
 0x125   :  { %v225_v27 = vmul.f32 %v223_v26, %v211_v10 }
 0x127   :  { %v851_v28 = vpop.eup %850  ;;  %v227_v29 = vadd.f32 1e-05, %v225_v27 }
 0x128   :  { %v229_v30 = vmul.f32 %v851_v28, %v226_v25  ;;  %vm235_vm2 = vweird.f32 %v851_v28 }
 0x129   :  { %852 = vrsqrt.f32 %v227_v29  ;;  %vm236_vm4 = vmor %vm234_vm3, %vm235_vm2  ;;  %vm244_vm6 = vweird.f32 %v227_v29  ;;  %vm304_vm3 = vcmp.ge.s32.totalorder %v301_v20, %v303_v60 }
 0x12a   :  { %v230_v31 = vmul.f32 %v851_v28, %v229_v30  ;;  %vm323_vm2 = vmand %vm321_vm14, %vm322_vm15  ;;  %v305_v23 = vsel %vm304_vm3, 0.0, %v1181_v22 }
 0x12c   :  { %v231_v32 = vmul.f32 0.5, %v230_v31 }
 0x12e   :  { %v232_v33 = vsub.f32 1.5, %v231_v32 }
 0x12f   :  { %v853_v34 = vpop.eup %852 }
 0x130   :  { %v233_v35 = vmul.f32 %v851_v28, %v232_v33  ;;  %v239_v36 = vmul.f32 %v853_v34, %v227_v29  ;;  %vm245_vm5 = vweird.f32 %v853_v34 }
 0x131   :  { %vm246_vm7 = vmor %vm244_vm6, %vm245_vm5  ;;  %vm427_vm5 = vcmask 1043456   ;;  %vm638_vm6 = vcmask 130048  }
 0x132   :  { %v240_v37 = vmul.f32 %v853_v34, %v239_v36  ;;  %v237_v38 = vsel %vm236_vm4, %v851_v28, %v233_v35  ;;  %vm372_vm4 = vcmask 64512  }
 0x133   :  { %v248_v41 = vmul.f32 %v237_v38, %v214_v13  ;;  %v1329_v13 = vsel %vm323_vm2, 1.0, %v1180_v62 }
 0x134   :  { %v241_v39 = vmul.f32 0.5, %v240_v37 }
 0x135   :  { %v254_v46 = vmul.f32 %v842_v42, %v248_v41 }
 0x136   :  { %v242_v40 = vsub.f32 1.5, %v241_v39 }
 0x137   :  { %v260_v49 = vadd.f32 %v843_v47, %v254_v46 }
 0x138   :  { %v243_v43 = vmul.f32 %v853_v34, %v242_v40 }
 0x13a   :  { %v247_v44 = vsel %vm246_vm7, %v853_v34, %v243_v43 }
 0x13b   :  { %v249_v45 = vmul.f32 %v247_v44, %v215_v18 }
 0x13d   :  { %v255_v48 = vmul.f32 %v842_v42, %v249_v45 }
 0x13f   :  { %v261_v50 = vadd.f32 %v843_v47, %v255_v48 }
 0x141   :  { %v262_v51 = vpack.c.bf16 %v261_v50, %v260_v49 }
 0x143   :  { %769 = vmatmul.msk.bf16.vlgmr.msra.gmra.mxu0 %vm198_vm0, %v262_v51 }
 0x1c0   :  { %v295_v53 = vpop.f32.mrf.mxu0 }
 0x1c1   :  { %v296_v54 = vadd.f32 %v844_v52, %v295_v53 }
 0x1c3   :  { %v1310_v55 = vpack.c.bf16 %v296_v54, %v296_v54  ;;  %v326_v4 = vmul.f32 %v1316_v63, %v296_v54  ;;  %v327_v5 = vmul.f32 %v1318_v1, %v296_v54  ;;  %v328_v14 = vmul.f32 %v1327_v12, %v296_v54 }
 0x1c4   :  { %v329_v15 = vmul.f32 %v1329_v13, %v296_v54 }
 0x1c5   :  { %334 = vrot.lane.b32.xlu2 %v1310_v55, %s1179_s8  ;;  %v330_v6 = vpack.c.bf16 %v327_v5, %v326_v4 }
 0x1c6   :  { %v331_v16 = vpack.c.bf16 %v329_v15, %v328_v14 }
 0x1c8   :  { %v297_v56 = vpop.f32.mrf.mxu0 }
 0x1c9   :  { %v298_v57 = vadd.f32 %v844_v52, %v297_v56 }
 0x1cb   :  { %v1313_v58 = vpack.c.bf16 %v298_v57, %v298_v57  ;;  %v457_v9 = vmul.f32 %v1316_v63, %v298_v57  ;;  %v458_v10 = vmul.f32 %v1318_v1, %v298_v57  ;;  %v459_v17 = vmul.f32 %v1327_v12, %v298_v57 }
 0x1cc   :  { %v460_v18 = vmul.f32 %v1329_v13, %v298_v57 }
 0x1cd   :  { %465 = vrot.lane.b32.xlu2 %v1313_v58, %s1179_s8  ;;  %v461_v11 = vpack.c.bf16 %v458_v10, %v457_v9 }
 0x1ce   :  { %v462_v19 = vpack.c.bf16 %v460_v18, %v459_v17 }
 0x21f   :  { %v335_v61 = vpop.permute.xlu2 %334 }
 0x220   :  { %v343_v3 = vsel %vm198_vm0, %v335_v61, 0 }
 0x221   :  { %352 = vmatpush.bf16.xpose.msra.mxu1 %v343_v3 }
 0x227   :  { %v466_v7 = vpop.permute.xlu2 %465 }
 0x228   :  { %774 = vmatmul.msk.bf16.vlgmr.msra.gmra.mxu1 %vm198_vm0, %v330_v6  ;;  %v474_v8 = vsel %vm198_vm0, %v466_v7, 0 }
 0x229   :  { %483 = vmatpush.bf16.xpose.msra.mxu3 %v474_v8 }
 0x230   :  { %778 = vmatmul.msk.bf16.vlgmr.msra.gmra.mxu3 %vm198_vm0, %v461_v11 }
 0x238   :  { %775 = vmatmul.msk.bf16.gmra.mxu1 %vm198_vm0, %v331_v16 }
 0x240   :  { %779 = vmatmul.msk.bf16.gmra.mxu3 %vm198_vm0, %v462_v19 }
 0x2a5   :  { %v354_v21 = vpop.f32.mrf.mxu1 }
 0x2a6   :  { %v364_v24 = vmul.f32 0.35355338, %v354_v21 }
 0x2a8   :  { %v368_v25 = vadd.f32 %v364_v24, %v305_v23 }
 0x2aa   :  { %v373_v26 = vsel %vm372_vm4, %v368_v25, -inf }
 0x2ab   :  { %374 = vmax.xlane.f32.xlu0 %v373_v26 }
 0x2ad   :  { %v356_v27 = vpop.f32.mrf.mxu1 }
 0x2ae   :  { %v365_v28 = vmul.f32 0.35355338, %v356_v27 }
 0x2b0   :  { %v369_v29 = vadd.f32 %v365_v28, %v305_v23 }
 0x2b2   :  { %v376_v30 = vsel %vm372_vm4, %v369_v29, -inf }
 0x2b3   :  { %v485_v31 = vpop.f32.mrf.mxu3  ;;  %377 = vmax.xlane.f32.xlu1 %v376_v30 }
 0x2b4   :  { %v495_v32 = vmul.f32 0.35355338, %v485_v31 }
 0x2b5   :  { %v359_v33 = vpop.f32.mrf.mxu1 }
 0x2b6   :  { %v366_v34 = vmul.f32 0.35355338, %v359_v33  ;;  %v499_v35 = vadd.f32 %v495_v32, %v305_v23 }
 0x2b8   :  { %v503_v36 = vsel %vm372_vm4, %v499_v35, -inf  ;;  %v370_v37 = vadd.f32 %v366_v34, %v305_v23 }
 0x2b9   :  { %504 = vmax.xlane.f32.xlu2 %v503_v36 }
 0x2ba   :  { %v379_v38 = vsel %vm372_vm4, %v370_v37, -inf }
 0x2bb   :  { %v487_v39 = vpop.f32.mrf.mxu3  ;;  %380 = vmax.xlane.f32.xlu1 %v379_v38 }
 0x2bc   :  { %v496_v40 = vmul.f32 0.35355338, %v487_v39 }
 0x2bd   :  { %v361_v41 = vpop.f32.mrf.mxu1 }
 0x2be   :  { %v500_v42 = vadd.f32 %v496_v40, %v305_v23  ;;  %v367_v43 = vmul.f32 0.35355338, %v361_v41 }
 0x2c0   :  { %v506_v44 = vsel %vm372_vm4, %v500_v42, -inf  ;;  %v371_v47 = vadd.f32 %v367_v43, %v305_v23 }
 0x2c1   :  { %507 = vmax.xlane.f32.xlu0 %v506_v44 }
 0x2c2   :  { %v382_v50 = vsel %vm372_vm4, %v371_v47, -inf }
 0x2c3   :  { %v490_v45 = vpop.f32.mrf.mxu3 }
 0x2c4   :  { %v497_v46 = vmul.f32 0.35355338, %v490_v45 }
 0x2c6   :  { %v501_v48 = vadd.f32 %v497_v46, %v305_v23 }
 0x2c8   :  { %v509_v49 = vsel %vm372_vm4, %v501_v48, -inf }
 0x2c9   :  { %510 = vmax.xlane.f32.xlu1 %v509_v49  ;;  %383 = vmax.xlane.f32.xlu0 %v382_v50 }
 0x2cb   :  { %v492_v51 = vpop.f32.mrf.mxu3 }
 0x2cc   :  { %v498_v52 = vmul.f32 0.35355338, %v492_v51 }
 0x2ce   :  { %v502_v53 = vadd.f32 %v498_v52, %v305_v23 }
 0x2d0   :  { %v512_v54 = vsel %vm372_vm4, %v502_v53, -inf }
 0x2d1   :  { %549 = vrot.lane.b32.xlu2 %v1313_v58, %s1173_s25  ;;  %513 = vmax.xlane.f32.xlu0 %v512_v54 }
 0x31e   :  { %v375_v56 = vpop.xlane.xlu0 %374 }
 0x31f   :  { %v385_v57 = vsub.f32 %v368_v25, %v375_v56 }
 0x321   :  { %v389_v59 = vmul.f32 1.442695, %v385_v57 }
 0x323   :  { %854 = vpow2.f32 %v389_v59 }
 0x326   :  { %v378_v60 = vpop.xlane.xlu1 %377 }
 0x327   :  { %v386_v61 = vsub.f32 %v369_v29, %v378_v60 }
 0x329   :  { %v1348_v62 = vpop.eup %854  ;;  %v391_v3 = vmul.f32 1.442695, %v386_v61 }
 0x32a   :  { %v397_v4 = vsel %vm372_vm4, %v1348_v62, 0.0 }
 0x32b   :  { %856 = vpow2.f32 %v391_v3  ;;  %398 = vadd.xlane.f32.xlu1 %v397_v4 }
 0x32c   :  { %v505_v5 = vpop.xlane.xlu2 %504 }
 0x32d   :  { %v515_v6 = vsub.f32 %v499_v35, %v505_v5 }
 0x32e   :  { %v381_v7 = vpop.xlane.xlu1 %380 }
 0x32f   :  { %v519_v8 = vmul.f32 1.442695, %v515_v6  ;;  %v387_v58 = vsub.f32 %v370_v37, %v381_v7 }
 0x331   :  { %v857_v9 = vpop.eup %856  ;;  %858 = vpow2.f32 %v519_v8  ;;  %v393_v10 = vmul.f32 1.442695, %v387_v58 }
 0x332   :  { %v400_v11 = vsel %vm372_vm4, %v857_v9, 0.0 }
 0x333   :  { %860 = vpow2.f32 %v393_v10  ;;  %401 = vadd.xlane.f32.xlu0 %v400_v11  ;;  %v817_v10 = vld [vmem:[#allocation13 + $0x8] sm:$0xff]  ;;  %v816_v11 = vld [vmem:[#allocation13] sm:$0xff] }
 0x334   :  { %v550_v14 = vpop.permute.xlu2 %549  ;;  %v508_v15 = vpop.xlane.xlu0 %507 }
 0x335   :  { %v516_v16 = vsub.f32 %v500_v42, %v508_v15  ;;  %v558_v17 = vsel %vm427_vm5, %v550_v14, 0 }
 0x336   :  { %567 = vmatpush.bf16.msrb.mxu0 %v558_v17  ;;  %v820_v17 = vld [vmem:[%s1407_s9] sm:$0xff] }
 0x337   :  { %v859_v18 = vpop.eup %858  ;;  %v521_v19 = vmul.f32 1.442695, %v516_v16  ;;  %v819_v16 = vld [vmem:[#allocation16 + $0x8] sm:$0xff]  ;;  %649 = vmatpush.bf16.msrb.mxu1 %v820_v17 }
 0x338   :  { %v527_v20 = vsel %vm372_vm4, %v859_v18, 0.0  ;;  %677 = vmatpush.bf16.msrb.mxu3 %v819_v16 }
 0x339   :  { %v861_v21 = vpop.eup %860  ;;  %862 = vpow2.f32 %v521_v19  ;;  %528 = vadd.xlane.f32.xlu1 %v527_v20  ;;  %v818_v19 = vld [vmem:[#allocation16] sm:$0xff] }
 0x33a   :  { %v403_v22 = vsel %vm372_vm4, %v861_v21, 0.0 }
 0x33b   :  { %404 = vadd.xlane.f32.xlu0 %v403_v22 }
 0x33c   :  { %v384_v23 = vpop.xlane.xlu0 %383  ;;  %v511_v25 = vpop.xlane.xlu1 %510  ;;  %678 = vmatpush.bf16.msrb.mxu3 %v818_v19 }
 0x33d   :  { %v388_v24 = vsub.f32 %v371_v47, %v384_v23  ;;  %v517_v28 = vsub.f32 %v501_v48, %v511_v25 }
 0x33f   :  { %v863_v26 = vpop.eup %862  ;;  %v395_v27 = vmul.f32 1.442695, %v388_v24  ;;  %v523_v30 = vmul.f32 1.442695, %v517_v28 }
 0x340   :  { %v530_v29 = vsel %vm372_vm4, %v863_v26, 0.0 }
 0x341   :  { %864 = vpow2.f32 %v395_v27 }
 0x342   :  { %866 = vpow2.f32 %v523_v30 }
 0x343   :  { %531 = vadd.xlane.f32.xlu0 %v530_v29 }
 0x344   :  { %v514_v35 = vpop.xlane.xlu0 %513 }
 0x345   :  { %v518_v36 = vsub.f32 %v502_v53, %v514_v35 }
 0x347   :  { %v865_v31 = vpop.eup %864  ;;  %v525_v37 = vmul.f32 1.442695, %v518_v36 }
 0x348   :  { %v406_v32 = vsel %vm372_vm4, %v865_v31, 0.0  ;;  %v867_v33 = vpop.eup %866 }
 0x349   :  { %v533_v34 = vsel %vm372_vm4, %v867_v33, 0.0  ;;  %868 = vpow2.f32 %v525_v37 }
 0x34b   :  { %407 = vadd.xlane.f32.xlu0 %v406_v32 }
 0x34f   :  { %v869_v38 = vpop.eup %868 }
 0x350   :  { %v536_v39 = vsel %vm372_vm4, %v869_v38, 0.0 }
 0x352   :  { %419 = vrot.lane.b32.xlu1 %v1310_v55, %s1173_s25 }
 0x353   :  { %534 = vadd.xlane.f32.xlu0 %v533_v34 }
 0x37c   :  { %537 = vadd.xlane.f32.xlu1 %v536_v39  ;;  %v196_v39 = vld [vmem:[#allocation5] sm:$0xff] }
 0x39e   :  { %v399_v41 = vpop.xlane.xlu1 %398 }
 0x3a6   :  { %v402_v40 = vpop.xlane.xlu0 %401 }
 0x3ac   :  { %v529_v43 = vpop.xlane.xlu1 %528 }
 0x3ad   :  { %870 = vrcp.f32 %v529_v43 }
 0x3ae   :  { %v405_v42 = vpop.xlane.xlu0 %404 }
 0x3b3   :  { %v871_v55 = vpop.eup %870 }
 0x3b4   :  { %v543_v46 = vmul.f32 %v871_v55, %v859_v18 }
 0x3b6   :  { %v532_v44 = vpop.xlane.xlu0 %531 }
 0x3b7   :  { %872 = vrcp.f32 %v532_v44 }
 0x3b8   :  { %874 = vrcp.f32 %v402_v40 }
 0x3b9   :  { %876 = vrcp.f32 %v399_v41  ;;  %v845_v41 = vld [vmem:[#allocation14] ss:$0 sm:$0xff] }
 0x3bd   :  { %v873_v45 = vpop.eup %872 }
 0x3be   :  { %v544_v47 = vmul.f32 %v873_v45, %v863_v26  ;;  %v875_v48 = vpop.eup %874  ;;  %v408_v56 = vpop.xlane.xlu0 %407  ;;  %v822_v45 = vld [vmem:[#allocation17 + $0x8] sm:$0xff] }
 0x3bf   :  { %v877_v50 = vpop.eup %876  ;;  %v414_v51 = vmul.f32 %v875_v48, %v857_v9  ;;  %878 = vrcp.f32 %v408_v56 }
 0x3c0   :  { %v547_v49 = vpack.c.bf16 %v544_v47, %v543_v46  ;;  %v413_v54 = vmul.f32 %v877_v50, %v1348_v62  ;;  %880 = vrcp.f32 %v405_v42 }
 0x3c2   :  { %780 = vmatmul.msk.bf16.vlgmr.msrb.gmra.mxu0 %vm372_vm4, %v547_v49  ;;  %v417_v57 = vpack.c.bf16 %v414_v51, %v413_v54  ;;  %v846_v49 = vld [vmem:[%s1408_s10] ss:$0 sm:$0xff]  ;;  %s1182_s10 = smov [#allocation19]  }
 0x3c3   :  { %s741_s22 = sshll.u32 %s1182_s10, 4  ;;  %s742_s22 = int_to_ptr.vmem [resolvable:$true] %s741_s22 }
 0x3c4   :  { %v420_v52 = vpop.permute.xlu1 %419 }
 0x3c5   :  { %v429_v53 = vsel %vm427_vm5, %v420_v52, 0  ;;  %v879_v59 = vpop.eup %878 }
 0x3c6   :  { %438 = vmatpush.bf16.msra.mxu2 %v429_v53  ;;  %v881_v60 = vpop.eup %880  ;;  %v416_v61 = vmul.f32 %v879_v59, %v865_v31  ;;  %v535_v5 = vpop.xlane.xlu0 %534 }
 0x3c7   :  { %v415_v3 = vmul.f32 %v881_v60, %v861_v21  ;;  %882 = vrcp.f32 %v535_v5  ;;  %v847_v60 = vld [vmem:[%s1410_s12] ss:$0 sm:$0xff] }
 0x3c9   :  { %776 = vmatmul.msk.bf16.vlgmr.msra.gmra.mxu2 %vm372_vm4, %v417_v57  ;;  %v418_v4 = vpack.c.bf16 %v416_v61, %v415_v3 }
 0x3ca   :  { %616 = vmatpush.bf16.msrb.mxu2 %v817_v10 }
 0x3cd   :  { %v883_v7 = vpop.eup %882 }
 0x3ce   :  { %v545_v8 = vmul.f32 %v883_v7, %v867_v33  ;;  %617 = vmatpush.bf16.msrb.mxu2 %v816_v11 }
 0x3d2   :  { %723 = vmatpush.bf16.msra.mxu2 %v822_v45 }
 0x3d9   :  { %777 = vmatmul.msk.bf16.gmra.mxu2 %vm372_vm4, %v418_v4 }
 0x3ef   :  { %v538_v6 = vpop.xlane.xlu1 %537 }
 0x3f0   :  { %884 = vrcp.f32 %v538_v6 }
 0x3f6   :  { %v885_v62 = vpop.eup %884 }
 0x3f7   :  { %v546_v58 = vmul.f32 %v885_v62, %v869_v38 }
 0x3f9   :  { %v548_v9 = vpack.c.bf16 %v546_v58, %v545_v8 }
 0x3fb   :  { %781 = vmatmul.msk.bf16.gmra.mxu0 %vm372_vm4, %v548_v9 }
 0x43f   :  { %v569_v15 = vpop.f32.mrf.mxu0 }
 0x440   :  { %v579_v26 = vmul.f32 %v1316_v63, %v569_v15 }
 0x447   :  { %v571_v20 = vpop.f32.mrf.mxu0 }
 0x448   :  { %v580_v23 = vmul.f32 %v1318_v1, %v571_v20 }
 0x44a   :  { %v583_v30 = vadd.f32 %v580_v23, %v579_v26 }
 0x44c   :  { %v440_v14 = vpop.f32.mrf.mxu2 }
 0x44d   :  { %v450_v27 = vmul.f32 %v1316_v63, %v440_v14  ;;  %v197_v63 = vld [vmem:[#allocation5 + $0x8] sm:$0xff] }
 0x44e   :  { %v629_v40 = vpack.c.bf16 %v197_v63, %v196_v39 }
 0x450   :  { %795 = vmatmul.msk.bf16.vlgmr.msrb.gmra.mxu1 %vm638_vm6, %v629_v40 }
 0x454   :  { %v442_v18 = vpop.f32.mrf.mxu2 }
 0x455   :  { %v451_v24 = vmul.f32 %v1318_v1, %v442_v18 }
 0x457   :  { %v454_v31 = vadd.f32 %v451_v24, %v450_v27 }
 0x45c   :  { %v445_v21 = vpop.f32.mrf.mxu2 }
 0x45d   :  { %v452_v28 = vmul.f32 %v1327_v12, %v445_v21 }
 0x45f   :  { %v455_v34 = vadd.f32 %v454_v31, %v452_v28 }
 0x464   :  { %v447_v25 = vpop.f32.mrf.mxu2 }
 0x465   :  { %v453_v32 = vmul.f32 %v1329_v13, %v447_v25 }
 0x467   :  { %v456_v37 = vadd.f32 %v455_v34, %v453_v32 }
 0x478   :  { %v574_v22 = vpop.f32.mrf.mxu0 }
 0x479   :  { %v581_v29 = vmul.f32 %v1327_v12, %v574_v22 }
 0x47b   :  { %v584_v35 = vadd.f32 %v583_v30, %v581_v29 }
 0x480   :  { %v576_v33 = vpop.f32.mrf.mxu0 }
 0x481   :  { %v582_v36 = vmul.f32 %v1329_v13, %v576_v33  ;;  %v821_v13 = vld [vmem:[#allocation17] sm:$0xff] }
 0x482   :  { %724 = vmatpush.bf16.msra.mxu2 %v821_v13 }
 0x483   :  { %v585_v1 = vadd.f32 %v584_v35, %v582_v36 }
 0x485   :  { %v586_v38 = vpack.c.bf16 %v585_v1, %v456_v37 }
 0x487   :  { %790 = vmatmul.msk.bf16.vlgmr.msrb.gmra.mxu2 %vm198_vm0, %v586_v38 }
 0x4cd   :  { %v651_v46 = vpop.f32.mrf.mxu1 }
 0x4d5   :  { %v653_v50 = vpop.f32.mrf.mxu1 }
 0x50a   :  { %v619_v12 = vpop.f32.mrf.mxu2 }
 0x50b   :  { %v620_v43 = vadd.f32 %v845_v41, %v619_v12 }
 0x50d   :  { %v731_v3 = vadd.f32 %v620_v43, %v1297_v0 }
 0x512   :  { %v621_v42 = vpop.f32.mrf.mxu2 }
 0x513   :  { %v622_v44 = vadd.f32 %v845_v41, %v621_v42 }
 0x515   :  { %v624_v55 = vpack.c.bf16 %v622_v44, %v620_v43  ;;  %v732_v7 = vadd.f32 %v622_v44, %v1301_v2 }
 0x517   :  { %804 = vmatmul.msk.bf16.vlgmr.msrb.gmra.mxu3 %vm198_vm0, %v624_v55 }
 0x59a   :  { %v680_v47 = vpop.f32.mrf.mxu3 }
 0x59b   :  { %v681_v48 = vadd.f32 %v680_v47, %v651_v46 }
 0x59d   :  { %v689_v52 = vadd.f32 %v846_v49, %v681_v48 }
 0x59f   :  { %v691_v56 = vmax.f32 %v689_v52, 0.0 }
 0x5a2   :  { %v682_v51 = vpop.f32.mrf.mxu3 }
 0x5a3   :  { %v683_v53 = vadd.f32 %v682_v51, %v653_v50 }
 0x5a5   :  { %v690_v54 = vadd.f32 %v846_v49, %v683_v53 }
 0x5a7   :  { %v692_v57 = vmax.f32 %v690_v54, 0.0 }
 0x5a9   :  { %v693_v59 = vpack.c.bf16 %v692_v57, %v691_v56 }
 0x5ab   :  { %813 = vmatmul.msk.bf16.vlgmr.msra.gmra.mxu2 %vm198_vm0, %v693_v59 }
 0x62e   :  { %v726_v61 = vpop.f32.mrf.mxu2 }
 0x62f   :  { %v727_v4 = vadd.f32 %v847_v60, %v726_v61 }
 0x631   :  { %v733_v5 = vadd.f32 %v731_v3, %v727_v4 }
 0x633   :  { %735 = vst.msk [vmem:[#allocation19] sm:$0xff] %vm198_vm0, %v733_v5 }
 0x636   :  { %v728_v6 = vpop.f32.mrf.mxu2 }
 0x637   :  { %v729_v62 = vadd.f32 %v847_v60, %v728_v6 }
 0x639   :  { %v734_v8 = vadd.f32 %v732_v7, %v729_v62 }
 0x63b   :  { %736 = vst.msk [vmem:[#allocation19 + $0x8] sm:$0xff] %vm198_vm0, %v734_v8 }
 0x63c   :  { %749 = dma.vmem_to_hbm [thread:$0]  %s742_s22, 256, %s744_s3, [#allocation4], %s1165_s16, %s1165_s16, %s1166_s17  }
 0x63d   :  { %1162 = dma.done.wait [#allocation4], 256  }
 0x63e   :  { %1163 = vsyncadd [#allocation4], 4294967040 }
 0x63f   :  { %754 = vsyncpa [#allocation3], 1 }
 0x640   :  { %755 = vsyncpa [#allocation6], 1 }
 0x641   :  { %756 = vsyncpa [#allocation9], 1 }
 0x642   :  { %757 = vsyncpa [#allocation12], 1 }
 0x643   :  { %758 = vsyncpa [#allocation15], 1 }
 0x644   :  { %759 = vsyncpa [#allocation18], 1 }
 0x645   :  { %760 = vsyncpa [#allocation4], 1 }

</bundles_post_ra>
